<compile_context>
chip_gen: v7x
topology: tpu7x:2x2x1
jax: 0.10.0
libtpu: 0.0.40
codegen_flags: <defaults>
</compile_context>

<pallas_src>
import functools

import jax
import jax.numpy as jnp
from jax import lax
from jax.experimental import pallas as pl
from jax.experimental.pallas import tpu as pltpu

_LANE = 128


def _pe_kernel(seed_ref, x_ref, pe_ref, o_ref, *, train, p, thr31, n_cols, chunk):
    # x_ref/o_ref: (B, TC), pe_ref: (1, TC)  -- pe broadcasts over the batch rows.
    y = x_ref[...].astype(jnp.float32) + pe_ref[...].astype(jnp.float32)

    if train and p > 0.0:
        if p >= 1.0:
            y = jnp.zeros_like(y)
        else:
            shape = y.shape
            row = lax.broadcasted_iota(jnp.int32, shape, 0).astype(jnp.uint32)
            col = lax.broadcasted_iota(jnp.int32, shape, 1).astype(jnp.uint32)
            c_off = (pl.program_id(0) * chunk).astype(jnp.uint32)
            # Unique per-element counter across the whole (B, S*D) tensor.
            flat = row * jnp.uint32(n_cols) + col + c_off
            seed = seed_ref[0].astype(jnp.uint32)

            # lowbias32-style integer mixer (pure VPU int ops; lowers on TPU
            # and in interpret mode).
            h = flat * jnp.uint32(0x9E3779B1) + seed * jnp.uint32(0x85EBCA77)
            h = h ^ (h >> 16)
            h = h * jnp.uint32(0x7FEB352D)
            h = h ^ (h >> 15)
            h = h * jnp.uint32(0x846CA68B)
            h = h ^ (h >> 16)

            # Top 31 bits -> nonnegative int32, signed threshold compare.
            r = (h >> 1).astype(jnp.int32)
            keep = r >= jnp.int32(thr31)          # P(keep) = 1 - thr31/2^31 ~ 1-p
            y = jnp.where(keep, y * (1.0 / (1.0 - p)), 0.0)

    o_ref[...] = y.astype(o_ref.dtype)


def _choose_chunk(n_cols, batch, target_block_bytes=1 << 20):
    """Largest 128-multiple chunk that divides n_cols, fits a ~1 MiB f32 block
    budget (per x/out buffer, double-buffered), and leaves >= 8 grid steps
    when possible."""
    if n_cols % _LANE != 0:
        return None
    budget = max(_LANE, (target_block_bytes // 4) // max(batch, 1))
    budget = (budget // _LANE) * _LANE
    steps = max(_LANE, ((n_cols // 8) // _LANE) * _LANE)
    cand = min(n_cols, budget, steps)
    cand = (cand // _LANE) * _LANE
    while cand >= _LANE:
        if n_cols % cand == 0:
            return cand
        cand -= _LANE
    return _LANE  # unreachable since n_cols % 128 == 0


def positional_encoding_forward(x, pe, *, dropout_p=0.1, train=False, seed=0):
    """x: (B, S, D); pe: (1, max_len, D). Matches PositionalEncoding.forward."""
    B, S, D = x.shape
    assert pe.shape[0] == 1 and pe.shape[2] == D and pe.shape[1] >= S

    n = S * D
    x2 = x.reshape(B, n)                       # free reshape (row-major view)

    tc = _choose_chunk(n, B)
    if tc is None:
        # Odd shapes (S*D not a multiple of 128): one full-row block.
        pe2 = pe[:, :S, :].reshape(1, n)
        tc = n
    else:
        # Pass pe un-sliced; the index_map windows the first S rows.
        pe2 = pe.reshape(1, pe.shape[1] * D)   # free reshape
    num_chunks = n // tc

    thr31 = min(max(int(round(float(dropout_p) * 2.0 ** 31)), 0), 2 ** 31 - 1)
    kernel = functools.partial(
        _pe_kernel, train=bool(train), p=float(dropout_p), thr31=thr31,
        n_cols=n, chunk=tc)

    seed_arr = jnp.asarray([seed], dtype=jnp.int32)

    out2 = pl.pallas_call(
        kernel,
        out_shape=jax.ShapeDtypeStruct((B, n), x.dtype),
        grid_spec=pltpu.PrefetchScalarGridSpec(
            num_scalar_prefetch=1,
            grid=(num_chunks,),
            in_specs=[
                pl.BlockSpec((B, tc), lambda c, seed: (0, c)),   # x chunk
                pl.BlockSpec((1, tc), lambda c, seed: (0, c)),   # pe chunk
            ],
            out_specs=pl.BlockSpec((B, tc), lambda c, seed: (0, c)),
        ),
        compiler_params=pltpu.CompilerParams(
            dimension_semantics=("parallel",),  # hash-based mask -> order-free
        ),
    )(seed_arr, x2, pe2)
    return out2.reshape(B, S, D)


if __name__ == "__main__":
    # Small shapes: batch=2, seq=8, d_model=32, max_len=16
    B, S, D, MAX_LEN = 2, 8, 32, 16
    dropout_p = 0.1

    key = jax.random.PRNGKey(0)
    kx, kpe = jax.random.split(key)
    x = jax.random.normal(kx, (B, S, D), dtype=jnp.float32)
    pe = jax.random.normal(kpe, (1, MAX_LEN, D), dtype=jnp.float32)  # learnable param

    # Eval mode: dropout is identity, deterministic.
    out = positional_encoding_forward(x, pe, dropout_p=dropout_p, train=False)
    out = jax.block_until_ready(out)
    ref = x + pe[:, :S, :]
    assert out.shape == (B, S, D)
    assert jnp.allclose(out, ref, atol=1e-6, rtol=1e-6), "eval-mode mismatch"

    # Train mode: stochastic inverted dropout inside the kernel.
    out_tr = positional_encoding_forward(
        x, pe, dropout_p=dropout_p, train=True, seed=1234)
    out_tr = jax.block_until_ready(out_tr)
    assert out_tr.shape == (B, S, D)
    # Kept elements must equal (x + pe) / (1 - p); dropped elements are 0.
    scaled = ref / (1.0 - dropout_p)
    kept = out_tr != 0.0
    assert jnp.allclose(jnp.where(kept, out_tr, scaled), scaled,
                        atol=1e-5, rtol=1e-5), "train-mode value mismatch"
    drop_frac = float(1.0 - jnp.mean(kept.astype(jnp.float32)))
    assert 0.0 < drop_frac < 0.4, f"unexpected drop fraction {drop_frac}"

    print("KERNEL_OK")
</pallas_src>

<mosaic_0001>
module attributes {stable_mosaic.version = 11 : i64} {
  func.func @_pe_kernel(%arg0: i32, %arg1: memref<1xi32, #tpu.memory_space<smem>>, %arg2: memref<2x128xf32, #tpu.memory_space<vmem>>, %arg3: memref<1x128xf32, #tpu.memory_space<vmem>>, %arg4: memref<2x128xf32, #tpu.memory_space<vmem>>) attributes {dimension_semantics = [#tpu.dimension_semantics<parallel>], iteration_bounds = array<i64: 2>, scalar_prefetch = 1 : i64, scratch_operands = 0 : i64, tpu.core_type = #tpu.core_type<tc>, window_params = [{transform_indices = @transform_0, window_bounds = array<i64: 2, 128>}, {transform_indices = @transform_1, window_bounds = array<i64: 1, 128>}, {transform_indices = @transform_2, window_bounds = array<i64: 2, 128>}]} {
    %c0 = arith.constant 0 : index
    %c0_0 = arith.constant 0 : index
    %0 = vector.load %arg2[%c0, %c0_0] : memref<2x128xf32, #tpu.memory_space<vmem>>, vector<2x128xf32>
    %c0_1 = arith.constant 0 : index
    %c0_2 = arith.constant 0 : index
    %1 = vector.load %arg3[%c0_1, %c0_2] : memref<1x128xf32, #tpu.memory_space<vmem>>, vector<1x128xf32>
    %2 = vector.broadcast %1 : vector<1x128xf32> to vector<2x128xf32>
    %3 = arith.addf %0, %2 : vector<2x128xf32>
    %c0_3 = arith.constant 0 : index
    %c0_4 = arith.constant 0 : index
    %4 = vector.load %arg4[%c0_3, %c0_4] : memref<2x128xf32, #tpu.memory_space<vmem>>, vector<2x128xf32>
    tpu.vector_store %arg4[%c0_3, %c0_4], %3 {strides = array<i32>} : memref<2x128xf32, #tpu.memory_space<vmem>>, vector<2x128xf32>,
    return
  }
  func.func @transform_0(%arg0: i32, %arg1: memref<1xi32, #tpu.memory_space<smem>>) -> (i32, i32) {
    %c0_i32 = arith.constant 0 : i32
    %c0_i32_0 = arith.constant 0 : i32
    return %c0_i32, %arg0 : i32, i32
  }
  func.func @transform_1(%arg0: i32, %arg1: memref<1xi32, #tpu.memory_space<smem>>) -> (i32, i32) {
    %c0_i32 = arith.constant 0 : i32
    %c0_i32_0 = arith.constant 0 : i32
    return %c0_i32, %arg0 : i32, i32
  }
  func.func @transform_2(%arg0: i32, %arg1: memref<1xi32, #tpu.memory_space<smem>>) -> (i32, i32) {
    %c0_i32 = arith.constant 0 : i32
    %c0_i32_0 = arith.constant 0 : i32
    return %c0_i32, %arg0 : i32, i32
  }
}

</mosaic_0001>

<bundles_post_ra>
// kernel: tpu_custom_call.1
= control target key start
LH: loop header
LB: loop body
LE: loop exit
PB: predicated region body
PF: predicated region fallthrough
CT: control target
= control target key end

     0   :  { %9 = vsyncpa [#allocation5], 0  ;;  %s623_s0 = inlined_call_operand.<no memory space> [shape: s32[1], index: 0, kind: input, shape index: {}]   ;;  %s624_s1 = inlined_call_operand.hbm [shape: f32[2,256], index: 1, kind: input, shape index: {}]   ;;  %s625_s2 = inlined_call_operand.vmem [shape: f32[1,512], index: 2, kind: input, shape index: {}]   ;;  %s626_s3 = inlined_call_operand.hbm [shape: f32[2,256], index: 3, kind: output, shape index: {}]  }
   0x1   :  { %11 = vsyncpa [#allocation5 + $0x1], 0 }
   0x2   :  { %12 = vsyncpa [#allocation6], 0 }
   0x3   :  { %14 = vsyncpa [#allocation6 + $0x1], 0  ;;  %s457_s12 = smov 0   ;;  %s459_s13 = smov 0  }
   0x4   :  { %s461_s14 = smov 0   ;;  %s463_s0 = smov 0  }
   0x5 LB: > { %s478_s15 = sadd.s32 4294967295, %s433_s0   ;;  %s278_s16 = sadd.s32 4294967294, %s433_s0   ;;  %s433_s0 = sphi %s463_s0, %s641_s0   ;;  %s429_s14 = sphi %s461_s14, %s640_s14   ;;  %s425_s13 = sphi %s459_s13, %s639_s13   ;;  %s421_s12 = sphi %s457_s12, %s638_s12  }
   0x6   : > { %s482_s17 = sadd.s32 1, %s433_s0   ;;  %s27_s18 = sadd.s32 1, %s429_s14 }
   0x7   : > { %s24_s19 = ssub.s32 %s433_s0, %s482_s17  ;;  %p34_p0 = scmp.ne.s32.totalorder %s429_s14, %s425_s13 }
   0x8   : > { %p25_p1 = scmp.eq.s32.totalorder %s24_s19, 0  ;;  %p35_p2 = scmp.eq.s32.totalorder %s433_s0, 0 }
   0x9   : > { %p40_p3 = scmp.ne.s32.totalorder %s425_s13, %s421_s12  ;;  %p41_p4 = scmp.eq.s32.totalorder %s478_s15, 0 }
   0xa   : > { %s494_s20 = scalar_select %p25_p1, %s429_s14, %s27_s18  }
   0xb   : > { %p496_p5 = por %p35_p2, %p34_p0  ;;  %p500_p6 = por %p41_p4, %p40_p3 }
   0xc   : > { %p90_p7 = scmp.eq.s32.totalorder %s478_s15, 1  ;;  %p96_p8 = scmp.eq.s32.totalorder %s278_s16, 1 }
   0xd   : > { %p303_p10 = scmp.lt.s32.totalorder %s433_s0, 2  ;;  %s116_s25 = sand.u32 1, %s429_s14  }
   0xe   : > { %p507_p11 = por %p90_p7, %p34_p0  ;;  %p511_p12 = por %p96_p8, %p40_p3 }
   0xf   : > { %s282_s26 = sshll.u32 %s433_s0, 5  ;;  %s281_s27 = sshll.u32 %s116_s25, 1 }
  0x10   : > { %s630_s23 = scalar_select %p507_p11, 1, 0 }
  0x11   : > { %s631_s24 = scalar_select %p511_p12, 1, 0 }
  0x12   : > { %s520_s30 = scalar_lea.hbm %s624_s1, %s282_s26  ;;  %s120_s4 = scalar_lea.vmem [#allocation4], %s281_s27 }
  0x13   : > { %s127_s5 = sshll.u32 %s120_s4, 4  ;;  %p524_p13 = pnand %p303_p10, %p496_p5  ;;  %s528_s5 = int_to_ptr.vmem [resolvable:$true] %s127_s5 }
  0x14   : > { %s117_s7 = scalar_lea.sflag [#allocation5], %s116_s25  ;;  %s337_s8 = scalar_lea.hbm %s520_s30, 32 }
  0x15   : > { %p338_p2 = scmp.ne.s32.totalorder %s520_s30, %s337_s8  ;;  %p339_p3 = pneg %p524_p13 }
  0x16   : > { %s342_s11 = scalar_lea.hbm %s624_s1, 64  ;;  %p343_p5 = scmp.lt.u32.totalorder %s520_s30, %s624_s1 }
  0x17   : > { %p340_p4 = pnand %p339_p3, %p338_p2  ;;  %p344_p8 = scmp.lt.u32.totalorder %s342_s11, %s337_s8 }
  0x18   : > { %p346_p9 = scmp.lt.u32.totalorder %s337_s8, %s520_s30 }
  0x19   : > { %p341_p7 = pneg %p340_p4  ;;  %p345_p10 = por %p344_p8, %p343_p5 }
  0x1b   : > { %p347_p0 = por %p346_p9, %p345_p10 }
  0x1d   : > { %p348_p1 = pnand %p347_p0, %p341_p7 }
  0x1f   : > { %351 = shalt.err (!%p348_p1)
}
  0x20   : > { %s352_s19 = scalar_lea.vmem %s528_s5, 32  ;;  %s435_s21 = smov [#allocation4]  }
  0x21   : > { %p353_p2 = scmp.ne.s32.totalorder %s528_s5, %s352_s19  ;;  %s357_s25 = sshll.u32 %s435_s21, 4  ;;  %s358_s25 = int_to_ptr.vmem [resolvable:$false] %s357_s25 }
  0x22   : > { %s359_s26 = scalar_lea.vmem %s358_s25, 64  ;;  %p360_p11 = scmp.lt.s32.totalorder %s528_s5, %s358_s25 }
  0x23   : > { %p355_p4 = pnand %p353_p2, %p339_p3  ;;  %p361_p5 = scmp.lt.s32.totalorder %s359_s26, %s352_s19 }
  0x25   : > { %p356_p12 = pneg %p355_p4  ;;  %p362_p8 = por %p361_p5, %p360_p11 }
  0x27   : > { %p363_p9 = pnand %p362_p8, %p356_p12 }
  0x29   : > { %366 = shalt.err (!%p363_p9)
}
  0x2a   : > { %298 = dma.hbm_to_vmem [thread:$0]  (!%p524_p13), %s520_s30, 32, %s528_s5, %s117_s7  }
  0x2b   : > { %p633_p0 = scmp.lt.s32.totalorder %s433_s0, 3  ;;  %p634_p1 = scmp.ge.s32.totalorder %s433_s0, 1 }
  0x2d   : > { %p139_p3 = pnand %p634_p1, %p633_p0 }
  0x2e   : > { %s562_s27 = sand.u32 (!%p139_p3), 1, %s425_s13  }
  0x2f   : > { %142 = sbr.rel (%p139_p3) target bundleno = 83 (0x53), region = 28  ;;  %s284_s28 = sshll.u32 (!%p139_p3), %s562_s27, 1 }
  0x30   : > { %s145_s29 = scalar_lea.sflag (!%p139_p3), [#allocation5], %s562_s27  ;;  %s148_s4 = scalar_lea.vmem (!%p139_p3), [#allocation4], %s284_s28 }
  0x36   : > { %412 = dma.done.wait (%p500_p6), %s145_s29, 32  }
  0x37   : > { %414 = vsyncadd (%p500_p6), %s145_s29, 4294967264  ;;  %p172_p11 = scmp.lt.s32.totalorder %s478_s15, 3  ;;  %s171_s8 = scalar_lea.vmem [#allocation7], %s284_s28  ;;  %v175_v0 = vld [vmem:[%s148_s4] sm:$0x3] }
  0x38   : > { %s199_s9 = sshll.u32 %s171_s8, 4  ;;  %s288_s10 = sshll.u32 %s478_s15, 5  ;;  %s576_s9 = int_to_ptr.vmem [resolvable:$true] %s199_s9 }
  0x39   : > { %s173_s30 = scalar_select %p172_p11, %s478_s15, 3 }
  0x3a   : > { %s581_s16 = scalar_lea.hbm %s626_s3, %s288_s10  ;;  %s186_s18 = scalar_lea.sflag [#allocation6], %s562_s27 }
  0x3b   : > { %s174_s7 = scalar_lea.vmem %s625_s2, %s173_s30  ;;  %s367_s19 = scalar_lea.vmem %s576_s9, 32 }
  0x3c   : > { %v286_v1 = vld [vmem:[%s174_s7] ss:$0 sm:$0xff]  ;;  %p368_p6 = scmp.ne.s32.totalorder %s576_s9, %s367_s19  ;;  %p635_p12 = scmp.ne.s32.totalorder %s630_s23, 0 }
  0x3d   : > { %v183_v2 = vadd.f32 %v286_v1, %v175_v0  ;;  %s436_s15 = smov [#allocation7]  }
  0x3e   : > { %p369_p13 = pnand %p368_p6, %p635_p12  ;;  %s371_s21 = sshll.u32 %s436_s15, 4  ;;  %s372_s21 = int_to_ptr.vmem [resolvable:$false] %s371_s21 }
  0x3f   : > { %184 = vst [vmem:[%s171_s8] sm:$0x3] %v183_v2  ;;  %s373_s25 = scalar_lea.vmem %s372_s21, 64  ;;  %p374_p10 = scmp.lt.s32.totalorder %s576_s9, %s372_s21 }
  0x40   : > { %p370_p7 = pneg %p369_p13  ;;  %p375_p2 = scmp.lt.s32.totalorder %s373_s25, %s367_s19 }
  0x42   : > { %p376_p4 = por %p375_p2, %p374_p10 }
  0x44   : > { %p377_p5 = pnand %p376_p4, %p370_p7 }
  0x46   : > { %380 = shalt.err (!%p377_p5)
}
  0x47   : > { %s381_s26 = scalar_lea.hbm %s581_s16, 32  ;;  %s385_s29 = scalar_lea.hbm %s626_s3, 64 }
  0x48   : > { %p382_p8 = scmp.ne.s32.totalorder %s581_s16, %s381_s26  ;;  %p386_p1 = scmp.lt.u32.totalorder %s581_s16, %s626_s3 }
  0x49   : > { %p387_p3 = scmp.lt.u32.totalorder %s385_s29, %s381_s26  ;;  %p389_p6 = scmp.lt.u32.totalorder %s381_s26, %s581_s16 }
  0x4a   : > { %p383_p9 = pnand %p382_p8, %p635_p12 }
  0x4b   : > { %p388_p11 = por %p387_p3, %p386_p1 }
  0x4c   : > { %p384_p0 = pneg %p383_p9 }
  0x4d   : > { %p390_p13 = por %p389_p6, %p388_p11 }
  0x4f   : > { %p391_p7 = pnand %p390_p13, %p384_p0 }
  0x51   : > { %394 = shalt.err (!%p391_p7)
}
  0x52   : > { %293 = dma.vmem_to_hbm [thread:$0]  (%p635_p12), %s576_s9, 32, %s581_s16, %s186_s18  }
  0x53 PF: > { %s211_s5 = sand.u32 1, %s421_s12   ;;  %p636_p10 = scmp.ne.s32.totalorder %s631_s24, 0 }
  0x54   : > { %p637_p2 = scmp.ge.s32.totalorder %s433_s0, 2  ;;  %s212_s6 = scalar_lea.sflag [#allocation6], %s211_s5 }
  0x56   : > { %p300_p4 = pnand %p637_p2, %p636_p10 }
  0x58   : > { %416 = dma.done.wait (!%p300_p4), %s212_s6, 32  }
  0x59   : > { %418 = vsyncadd (!%p300_p4), %s212_s6, 4294967264  ;;  %p17_p5 = scmp.ge.s32.totalorder %s482_s17, 4   ;;  %s638_s12 = smov %s425_s13 }
  0x5a   : > { %s639_s13 = smov %s429_s14  ;;  %s640_s14 = smov %s494_s20 }
  0x5b   : > { %s641_s0 = smov %s482_s17  ;;  %19 = sbr.rel (!%p17_p5) target bundleno = 5 (0x5), region = 76 }
  0x62   :  { %217 = vsyncpa [#allocation5], 1 }
  0x63   :  { %219 = vsyncpa [#allocation5 + $0x1], 1 }
  0x64   :  { %220 = vsyncpa [#allocation6], 1 }
  0x65   :  { %222 = vsyncpa [#allocation6 + $0x1], 1 }

</bundles_post_ra>
